<compile_context>
chip_gen: v5e
topology: v5e:2x2
jax: 0.10.0
libtpu: 0.0.40
codegen_flags: <defaults>
</compile_context>

<pallas_src>
import jax
import jax.numpy as jnp
from jax.experimental import pallas as pl
from jax.experimental.pallas import tpu as pltpu


# ------------------------------- kernel -------------------------------

def _dlm_kernel(x_ref, weff_ref, beff_ref, w2_ref, b2_ref,
                logits_ref, lse_ref, h_ref, m_ref, l_ref):
    """One (batch tile, vocab tile) grid step.

    x_ref      : (Bt, Din_p)  bf16  conv-folded linear1 input (resident across v)
    weff_ref   : (Din_p, F1_p) bf16 conv-folded linear1 weight (single-buffered)
    beff_ref   : (1, F1_p)    f32   conv-folded linear1 bias
    w2_ref     : (F1_p, Vt)   bf16  linear2 weight, one vocab tile (streamed)
    b2_ref     : (1, Vt)      f32   linear2 bias, one vocab tile (streamed)
    logits_ref : (Bt, Vt)     f32   unnormalized logits for this vocab tile (streamed out)
    lse_ref    : (Bt, 1)      f32   per-row log-sum-exp (written on last vocab tile)
    h_ref      : (Bt, F1_p)   bf16  ReLU(linear1) scratch (computed once per batch tile)
    m_ref/l_ref: (Bt, 1)      f32   online softmax running max / running sum-exp
    """
    v = pl.program_id(1)
    nv = pl.num_programs(1)

    @pl.when(v == 0)
    def _():
        # linear1 (conv pre-folded) + ReLU, computed once per batch tile.
        h = jnp.dot(x_ref[...], weff_ref[...],
                    preferred_element_type=jnp.float32) + beff_ref[...]
        h_ref[...] = jnp.maximum(h, 0.0).astype(h_ref.dtype)  # single f32->bf16 cast
        m_ref[...] = jnp.full_like(m_ref, -jnp.inf)
        l_ref[...] = jnp.zeros_like(l_ref)

    # linear2 for this vocab tile (bf16 MXU operands, f32 accumulation).
    logits = jnp.dot(h_ref[...], w2_ref[...],
                     preferred_element_type=jnp.float32) + b2_ref[...]

    # Online log-sum-exp across vocab tiles.
    m_prev = m_ref[...]
    m_new = jnp.maximum(m_prev, jnp.max(logits, axis=-1, keepdims=True))
    l_new = (l_ref[...] * jnp.exp(m_prev - m_new)
             + jnp.sum(jnp.exp(logits - m_new), axis=-1, keepdims=True))
    m_ref[...] = m_new
    l_ref[...] = l_new

    # Per-tile (lane-dense) output write — pipelined with the next tile's DMA.
    logits_ref[...] = logits

    @pl.when(v == nv - 1)
    def _():
        lse_ref[...] = m_new + jnp.log(l_new)


# ------------------------------ helpers -------------------------------

def _round_up(x, m):
    return (x + m - 1) // m * m


def _vmem_capacity_bytes():
    try:
        return int(pltpu.get_tpu_info().vmem_capacity_bytes)
    except Exception:
        return 64 * 1024 * 1024  # conservative (v7x per-core)


def _make_spec(shape, index_map, buffer_count=None):
    """BlockSpec; optionally request N-deep buffering (single-buffer resident weights)."""
    if buffer_count is not None:
        try:
            return pl.BlockSpec(shape, index_map,
                                pipeline_mode=pl.Buffered(buffer_count))
        except Exception:
            pass
    return pl.BlockSpec(shape, index_map)


def _vmem_bytes(Bt, Din_p, F1_p, Vt):
    """Approximate VMEM footprint of the tile plan (buffers + scratch)."""
    b = 0
    b += 2 * Bt * Din_p * 2            # x tile (bf16, double-buffered)
    b += 1 * Din_p * F1_p * 2          # W_eff (bf16, single-buffered)
    b += 1 * F1_p * 4                  # b_eff
    b += 2 * F1_p * Vt * 2             # W2 tile (bf16, double-buffered)
    b += 2 * Vt * 4                    # b2 tile
    b += 2 * Bt * Vt * 4               # logits output tile (f32, double-buffered)
    b += 2 * Bt * 4                    # lse output
    b += Bt * F1_p * 2 + 2 * Bt * 4    # scratch: h (bf16) + m/l
    return b


def _im2col(img, K, S):
    """img: (B, 1, H, W) NCHW -> patches (K*K, B, Ho*Wo), row-major over (kh, kw)."""
    B, _, H, W = img.shape
    Ho = (H - K) // S + 1
    Wo = (W - K) // S + 1
    cols = []
    for kh in range(K):
        for kw in range(K):
            sl = img[:, 0, kh:kh + S * (Ho - 1) + 1:S, kw:kw + S * (Wo - 1) + 1:S]
            cols.append(sl.reshape(B, Ho * Wo))
    return jnp.stack(cols, axis=0), Ho, Wo


# ------------------------- one-time preparation -------------------------

def prepare_params(params, *, kernel_size, stride, context_size,
                   block_v=512, max_block_b=128):
    """Fold the conv into linear1 and pad/cast the static operands ONCE."""
    emb_table = params["embedding"]          # (V, ED)
    conv_w = params["conv_w"]                # (OC, 1, K, K)
    conv_b = params["conv_b"]                # (OC,)
    w1, b1 = params["w1"], params["b1"]      # (F1, OC*P), (F1,)
    w2, b2 = params["w2"], params["b2"]      # (V, F1),   (V,)

    V, ED = emb_table.shape
    OC = conv_w.shape[0]
    K, S = kernel_size, stride
    F1 = w1.shape[0]

    Ho = (context_size - K) // S + 1
    Wo = (ED - K) // S + 1
    P = Ho * Wo
    KK = K * K
    assert OC * P == w1.shape[1], "conv output size must match linear1 in_features"

    convw_kkoc = conv_w.reshape(OC, KK).T                 # (KK, OC)
    w1r = w1.reshape(F1, OC, P)                           # (F1, OC, P)
    w_eff = jnp.einsum("ko,fop->kpf", convw_kkoc, w1r).reshape(KK * P, F1)
    b_eff = b1 + jnp.einsum("o,fop->f", conv_b, w1r)
    w2t = w2.T                                            # (F1, V)

    Din = KK * P
    Din_p = _round_up(Din, 128)
    F1_p = _round_up(F1, 128)

    # Pick the vocab tile: as wide as fits a per-generation VMEM budget.
    budget = int(_vmem_capacity_bytes() * 3 // 4)
    Bt_plan = _round_up(max_block_b, 8)
    Vt = min(_round_up(block_v, 128), _round_up(V, 128))
    while _vmem_bytes(Bt_plan, Din_p, F1_p, Vt) > budget and Vt > 128:
        Vt = max(128, _round_up(Vt // 2, 128))
    V_p = _round_up(V, Vt)

    w_eff_p = jnp.zeros((Din_p, F1_p), jnp.bfloat16).at[:Din, :F1].set(
        w_eff.astype(jnp.bfloat16))
    b_eff_p = jnp.zeros((1, F1_p), jnp.float32).at[0, :F1].set(
        b_eff.astype(jnp.float32))
    w2_p = jnp.zeros((F1_p, V_p), jnp.bfloat16).at[:F1, :V].set(
        w2t.astype(jnp.bfloat16))
    # Padded vocab columns get a hugely negative bias so they vanish from the softmax.
    b2_p = jnp.full((1, V_p), -1e30, jnp.float32).at[0, :V].set(
        b2.astype(jnp.float32))

    return dict(
        embedding=emb_table,
        w_eff=w_eff_p, b_eff=b_eff_p, w2=w2_p, b2=b2_p,
        meta=dict(K=K, S=S, V=V, Din=Din, Din_p=Din_p, F1_p=F1_p,
                  Vt=Vt, V_p=V_p, max_block_b=max_block_b, vmem_budget=budget),
    )


# ------------------------------- forward -------------------------------

def deep_language_model_forward(inputs, prepared, *, block_b=None):
    meta = prepared["meta"]
    K, S = meta["K"], meta["S"]
    V, Din, Din_p = meta["V"], meta["Din"], meta["Din_p"]
    F1_p, Vt, V_p = meta["F1_p"], meta["Vt"], meta["V_p"]

    B = inputs.shape[0]

    # ---- wrapper glue: embedding gather + im2col (per-call, depends on tokens) ----
    embeds = jnp.take(prepared["embedding"], inputs, axis=0)   # (B, CTX, ED)
    patches, _, _ = _im2col(embeds[:, None, :, :], K, S)       # (KK, B, P)
    x_in = patches.transpose(1, 0, 2).reshape(B, Din)          # (B, Din)

    # ---- batch tile: multiple of 8; >=2 tiles when possible (v7x megacore) ----
    if block_b is None:
        B8 = _round_up(B, 8)
        if B8 < 16:
            Bt = B8
        else:
            Bt = min(_round_up(meta["max_block_b"], 8), _round_up((B8 + 1) // 2, 8))
    else:
        Bt = _round_up(block_b, 8)
    B_p = _round_up(B, Bt)
    nb = B_p // Bt
    nv = V_p // Vt

    x_p = jnp.zeros((B_p, Din_p), jnp.bfloat16).at[:B, :Din].set(
        x_in.astype(jnp.bfloat16))

    req = _vmem_bytes(Bt, Din_p, F1_p, Vt)
    vmem_limit = int(min(meta["vmem_budget"], max(32 * 1024 * 1024, 2 * req)))
    vmem_limit = max(vmem_limit, req)

    try:
        cost = pl.CostEstimate(
            flops=int(2 * B_p * Din_p * F1_p + 2 * B_p * F1_p * V_p),
            transcendentals=int(B_p * V_p),
            bytes_accessed=int(F1_p * V_p * 2 * nb + B_p * V_p * 4
                               + B_p * Din_p * 2 + Din_p * F1_p * 2),
        )
    except Exception:
        cost = None

    logits_p, lse_p = pl.pallas_call(
        _dlm_kernel,
        out_shape=(jax.ShapeDtypeStruct((B_p, V_p), jnp.float32),
                   jax.ShapeDtypeStruct((B_p, 1), jnp.float32)),
        grid=(nb, nv),
        in_specs=[
            pl.BlockSpec((Bt, Din_p), lambda b, v: (b, 0)),             # x (per b)
            _make_spec((Din_p, F1_p), lambda b, v: (0, 0), 1),          # W_eff (resident)
            _make_spec((1, F1_p), lambda b, v: (0, 0), 1),              # b_eff (resident)
            pl.BlockSpec((F1_p, Vt), lambda b, v: (0, v)),              # W2 tile (streamed)
            pl.BlockSpec((1, Vt), lambda b, v: (0, v)),                 # b2 tile (streamed)
        ],
        out_specs=[
            pl.BlockSpec((Bt, Vt), lambda b, v: (b, v)),                # logits per tile
            pl.BlockSpec((Bt, 1), lambda b, v: (b, 0)),                 # lse per batch tile
        ],
        scratch_shapes=[
            pltpu.VMEM((Bt, F1_p), jnp.bfloat16),   # h = ReLU(linear1), bf16 once
            pltpu.VMEM((Bt, 1), jnp.float32),       # running max
            pltpu.VMEM((Bt, 1), jnp.float32),       # running sum-exp
        ],
        compiler_params=pltpu.CompilerParams(
            dimension_semantics=("parallel", "arbitrary"),
            vmem_limit_bytes=vmem_limit,
        ),
        cost_estimate=cost,
    )(x_p, prepared["w_eff"], prepared["b_eff"], prepared["w2"], prepared["b2"])

    # log_softmax finalize (tiny elementwise pass; padded rows/cols sliced off).
    return logits_p[:B, :V] - lse_p[:B]


# ------------------------------ reference ------------------------------

def reference_forward(inputs, params, *, kernel_size, stride):
    """Pure-JAX f32 reference matching the intended PyTorch forward."""
    emb = jnp.take(params["embedding"], inputs, axis=0)
    img = emb[:, None, :, :]
    conv = jax.lax.conv_general_dilated(
        img, params["conv_w"], (stride, stride), "VALID",
        dimension_numbers=("NCHW", "OIHW", "NCHW"))
    conv = conv + params["conv_b"][None, :, None, None]
    flat = conv.reshape(inputs.shape[0], -1)
    h = jnp.maximum(flat @ params["w1"].T + params["b1"], 0.0)
    logits = h @ params["w2"].T + params["b2"]
    return jax.nn.log_softmax(logits, axis=1)


def init_params(key, vocab_size, embedding_dim, context_size, out_channel, kernel_size):
    F1 = int(vocab_size / 10.0)                 # self.linear_features
    in1 = context_size * 2 * embedding_dim      # linear1 in_features
    ks = jax.random.split(key, 7)

    def u(k, shape, fan_in):
        bound = 1.0 / float(fan_in) ** 0.5
        return jax.random.uniform(k, shape, jnp.float32, -bound, bound)

    return dict(
        embedding=jax.random.normal(ks[0], (vocab_size, embedding_dim), jnp.float32),
        conv_w=u(ks[1], (out_channel, 1, kernel_size, kernel_size),
                 kernel_size * kernel_size),
        conv_b=u(ks[2], (out_channel,), kernel_size * kernel_size),
        w1=u(ks[3], (F1, in1), in1),
        b1=u(ks[4], (F1,), in1),
        w2=u(ks[5], (vocab_size, F1), F1),
        b2=u(ks[6], (vocab_size,), F1),
    )


if __name__ == "__main__":
    # Small shapes consistent with the module: conv(1x1, stride 1, out_channel=2)
    # makes the flattened conv output exactly context_size * 2 * embedding_dim.
    vocab_size = 320          # -> linear_features = 32
    embedding_dim = 16
    context_size = 8
    out_channel = 2
    kernel_size = 1
    stride = 1
    batch = 2

    key = jax.random.PRNGKey(0)
    k_params, k_ids = jax.random.split(key)
    params = init_params(k_params, vocab_size, embedding_dim, context_size,
                         out_channel, kernel_size)
    inputs = jax.random.randint(k_ids, (batch, context_size), 0, vocab_size,
                                dtype=jnp.int32)

    # One-time fold/pad/cast of static params (kept out of the per-call path).
    prepared = prepare_params(params, kernel_size=kernel_size, stride=stride,
                              context_size=context_size, block_v=512)

    out = deep_language_model_forward(inputs, prepared)
    out = jax.block_until_ready(out)

    ref = reference_forward(inputs, params, kernel_size=kernel_size, stride=stride)
    assert out.shape == (batch, vocab_size)
    assert bool(jnp.all(jnp.isfinite(out))), "non-finite log-probs"
    assert jnp.allclose(out, ref, atol=2.5e-2, rtol=2.5e-2), "mismatch vs JAX reference"

    print("KERNEL_OK")
</pallas_src>

<mosaic_0001>
module attributes {stable_mosaic.version = 11 : i64} {
  func.func @_dlm_kernel(%arg0: i32, %arg1: i32, %arg2: memref<8x128xbf16, #tpu.memory_space<vmem>>, %arg3: memref<128x128xbf16, #tpu.memory_space<vmem>>, %arg4: memref<1x128xf32, #tpu.memory_space<vmem>>, %arg5: memref<128x384xbf16, #tpu.memory_space<vmem>>, %arg6: memref<1x384xf32, #tpu.memory_space<vmem>>, %arg7: memref<8x384xf32, #tpu.memory_space<vmem>>, %arg8: memref<8x1xf32, #tpu.memory_space<vmem>>, %arg9: memref<8x128xbf16, #tpu.memory_space<vmem>>, %arg10: memref<8x1xf32, #tpu.memory_space<vmem>>, %arg11: memref<8x1xf32, #tpu.memory_space<vmem>>) attributes {dimension_semantics = [#tpu.dimension_semantics<parallel>, #tpu.dimension_semantics<arbitrary>], iteration_bounds = array<i64: 1, 1>, scalar_prefetch = 0 : i64, scratch_operands = 3 : i64, tpu.core_type = #tpu.core_type<tc>, window_params = [{transform_indices = @transform_0, window_bounds = array<i64: 8, 128>}, {pipeline_mode = #tpu.pipeline_mode<synchronous>, transform_indices = @transform_1, window_bounds = array<i64: 128, 128>}, {pipeline_mode = #tpu.pipeline_mode<synchronous>, transform_indices = @transform_2, window_bounds = array<i64: 1, 128>}, {transform_indices = @transform_3, window_bounds = array<i64: 128, 384>}, {transform_indices = @transform_4, window_bounds = array<i64: 1, 384>}, {transform_indices = @transform_5, window_bounds = array<i64: 8, 384>}, {transform_indices = @transform_6, window_bounds = array<i64: 8, 1>}]} {
    %c0_i32 = arith.constant 0 : i32
    %0 = arith.cmpi eq, %arg1, %c0_i32 : i32
    %1 = arith.extui %0 : i1 to i32
    %c0_i32_0 = arith.constant 0 : i32
    %2 = arith.cmpi ne, %1, %c0_i32_0 : i32
    scf.if %2 {
      %c0_20 = arith.constant 0 : index
      %c0_21 = arith.constant 0 : index
      %29 = vector.load %arg2[%c0_20, %c0_21] : memref<8x128xbf16, #tpu.memory_space<vmem>>, vector<8x128xbf16>
      %c0_22 = arith.constant 0 : index
      %c0_23 = arith.constant 0 : index
      %30 = vector.load %arg3[%c0_22, %c0_23] : memref<128x128xbf16, #tpu.memory_space<vmem>>, vector<128x128xbf16>
      %cst_24 = arith.constant dense<0.000000e+00> : vector<8x128xf32>
      %31 = tpu.matmul %29, %30, %cst_24 {dimension_numbers = #tpu.dot_dimension_numbers<[1], [0], [0], [1], [0, 0, 1, 1], [], []>} : vector<8x128xbf16>, vector<128x128xbf16>, vector<8x128xf32> -> vector<8x128xf32>
      %c0_25 = arith.constant 0 : index
      %c0_26 = arith.constant 0 : index
      %32 = vector.load %arg4[%c0_25, %c0_26] : memref<1x128xf32, #tpu.memory_space<vmem>>, vector<1x128xf32>
      %33 = vector.broadcast %32 : vector<1x128xf32> to vector<8x128xf32>
      %34 = arith.addf %31, %33 : vector<8x128xf32>
      %cst_27 = arith.constant 0.000000e+00 : f32
      %35 = vector.broadcast %cst_27 : f32 to vector<8x128xf32>
      %36 = arith.maximumf %34, %35 : vector<8x128xf32>
      %37 = arith.truncf %36 : vector<8x128xf32> to vector<8x128xbf16>
      %c0_28 = arith.constant 0 : index
      %c0_29 = arith.constant 0 : index
      %38 = vector.load %arg9[%c0_28, %c0_29] : memref<8x128xbf16, #tpu.memory_space<vmem>>, vector<8x128xbf16>
      tpu.vector_store %arg9[%c0_28, %c0_29], %37 {strides = array<i32>} : memref<8x128xbf16, #tpu.memory_space<vmem>>, vector<8x128xbf16>,
      %cst_30 = arith.constant 0xFF800000 : f32
      %39 = vector.broadcast %cst_30 : f32 to vector<8x1xf32>
      %c0_31 = arith.constant 0 : index
      %c0_32 = arith.constant 0 : index
      %40 = vector.load %arg10[%c0_31, %c0_32] : memref<8x1xf32, #tpu.memory_space<vmem>>, vector<8x1xf32>
      tpu.vector_store %arg10[%c0_31, %c0_32], %39 {strides = array<i32>} : memref<8x1xf32, #tpu.memory_space<vmem>>, vector<8x1xf32>,
      %cst_33 = arith.constant 0.000000e+00 : f32
      %41 = vector.broadcast %cst_33 : f32 to vector<8x1xf32>
      %c0_34 = arith.constant 0 : index
      %c0_35 = arith.constant 0 : index
      %42 = vector.load %arg11[%c0_34, %c0_35] : memref<8x1xf32, #tpu.memory_space<vmem>>, vector<8x1xf32>
      tpu.vector_store %arg11[%c0_34, %c0_35], %41 {strides = array<i32>} : memref<8x1xf32, #tpu.memory_space<vmem>>, vector<8x1xf32>,
    } else {
    }
    %c0 = arith.constant 0 : index
    %c0_1 = arith.constant 0 : index
    %3 = vector.load %arg9[%c0, %c0_1] : memref<8x128xbf16, #tpu.memory_space<vmem>>, vector<8x128xbf16>
    %c0_2 = arith.constant 0 : index
    %c0_3 = arith.constant 0 : index
    %4 = vector.load %arg5[%c0_2, %c0_3] : memref<128x384xbf16, #tpu.memory_space<vmem>>, vector<128x384xbf16>
    %cst = arith.constant dense<0.000000e+00> : vector<8x384xf32>
    %5 = tpu.matmul %3, %4, %cst {dimension_numbers = #tpu.dot_dimension_numbers<[1], [0], [0], [1], [0, 0, 1, 1], [], []>} : vector<8x128xbf16>, vector<128x384xbf16>, vector<8x384xf32> -> vector<8x384xf32>
    %c0_4 = arith.constant 0 : index
    %c0_5 = arith.constant 0 : index
    %6 = vector.load %arg6[%c0_4, %c0_5] : memref<1x384xf32, #tpu.memory_space<vmem>>, vector<1x384xf32>
    %7 = vector.broadcast %6 : vector<1x384xf32> to vector<8x384xf32>
    %8 = arith.addf %5, %7 : vector<8x384xf32>
    %c0_6 = arith.constant 0 : index
    %c0_7 = arith.constant 0 : index
    %9 = vector.load %arg10[%c0_6, %c0_7] : memref<8x1xf32, #tpu.memory_space<vmem>>, vector<8x1xf32>
    %cst_8 = arith.constant dense<0xFF800000> : vector<8xf32>
    %10 = vector.multi_reduction <maximumf>, %8, %cst_8 [1] : vector<8x384xf32> to vector<8xf32>
    %11 = vector.shape_cast %10 : vector<8xf32> to vector<8x1xf32>
    %12 = arith.maximumf %9, %11 : vector<8x1xf32>
    %c0_9 = arith.constant 0 : index
    %c0_10 = arith.constant 0 : index
    %13 = vector.load %arg11[%c0_9, %c0_10] : memref<8x1xf32, #tpu.memory_space<vmem>>, vector<8x1xf32>
    %14 = arith.subf %9, %12 : vector<8x1xf32>
    %15 = math.exp %14 : vector<8x1xf32>
    %16 = arith.mulf %13, %15 : vector<8x1xf32>
    %17 = vector.broadcast %12 : vector<8x1xf32> to vector<8x384xf32>
    %18 = arith.subf %8, %17 : vector<8x384xf32>
    %19 = math.exp %18 : vector<8x384xf32>
    %cst_11 = arith.constant dense<0.000000e+00> : vector<8xf32>
    %20 = vector.multi_reduction <add>, %19, %cst_11 [1] : vector<8x384xf32> to vector<8xf32>
    %21 = vector.shape_cast %20 : vector<8xf32> to vector<8x1xf32>
    %22 = arith.addf %16, %21 : vector<8x1xf32>
    %c0_12 = arith.constant 0 : index
    %c0_13 = arith.constant 0 : index
    %23 = vector.load %arg10[%c0_12, %c0_13] : memref<8x1xf32, #tpu.memory_space<vmem>>, vector<8x1xf32>
    tpu.vector_store %arg10[%c0_12, %c0_13], %12 {strides = array<i32>} : memref<8x1xf32, #tpu.memory_space<vmem>>, vector<8x1xf32>,
    %c0_14 = arith.constant 0 : index
    %c0_15 = arith.constant 0 : index
    %24 = vector.load %arg11[%c0_14, %c0_15] : memref<8x1xf32, #tpu.memory_space<vmem>>, vector<8x1xf32>
    tpu.vector_store %arg11[%c0_14, %c0_15], %22 {strides = array<i32>} : memref<8x1xf32, #tpu.memory_space<vmem>>, vector<8x1xf32>,
    %c0_16 = arith.constant 0 : index
    %c0_17 = arith.constant 0 : index
    %25 = vector.load %arg7[%c0_16, %c0_17] : memref<8x384xf32, #tpu.memory_space<vmem>>, vector<8x384xf32>
    tpu.vector_store %arg7[%c0_16, %c0_17], %8 {strides = array<i32>} : memref<8x384xf32, #tpu.memory_space<vmem>>, vector<8x384xf32>,
    %c0_i32_18 = arith.constant 0 : i32
    %26 = arith.cmpi eq, %arg1, %c0_i32_18 : i32
    %27 = arith.extui %26 : i1 to i32
    %c0_i32_19 = arith.constant 0 : i32
    %28 = arith.cmpi ne, %27, %c0_i32_19 : i32
    scf.if %28 {
      %29 = math.log %22 : vector<8x1xf32>
      %30 = arith.addf %12, %29 : vector<8x1xf32>
      %c0_20 = arith.constant 0 : index
      %c0_21 = arith.constant 0 : index
      %31 = vector.load %arg8[%c0_20, %c0_21] : memref<8x1xf32, #tpu.memory_space<vmem>>, vector<8x1xf32>
      tpu.vector_store %arg8[%c0_20, %c0_21], %30 {strides = array<i32>} : memref<8x1xf32, #tpu.memory_space<vmem>>, vector<8x1xf32>,
    } else {
    }
    return
  }
  func.func @transform_0(%arg0: i32, %arg1: i32) -> (i32, i32) {
    %c0_i32 = arith.constant 0 : i32
    %c0_i32_0 = arith.constant 0 : i32
    return %arg0, %c0_i32 : i32, i32
  }
  func.func @transform_1(%arg0: i32, %arg1: i32) -> (i32, i32) {
    %c0_i32 = arith.constant 0 : i32
    %c0_i32_0 = arith.constant 0 : i32
    %c0_i32_1 = arith.constant 0 : i32
    return %c0_i32, %c0_i32_0 : i32, i32
  }
  func.func @transform_2(%arg0: i32, %arg1: i32) -> (i32, i32) {
    %c0_i32 = arith.constant 0 : i32
    %c0_i32_0 = arith.constant 0 : i32
    %c0_i32_1 = arith.constant 0 : i32
    return %c0_i32, %c0_i32_0 : i32, i32
  }
  func.func @transform_3(%arg0: i32, %arg1: i32) -> (i32, i32) {
    %c0_i32 = arith.constant 0 : i32
    %c0_i32_0 = arith.constant 0 : i32
    return %c0_i32, %arg1 : i32, i32
  }
  func.func @transform_4(%arg0: i32, %arg1: i32) -> (i32, i32) {
    %c0_i32 = arith.constant 0 : i32
    %c0_i32_0 = arith.constant 0 : i32
    return %c0_i32, %arg1 : i32, i32
  }
  func.func @transform_5(%arg0: i32, %arg1: i32) -> (i32, i32) {
    %c0_i32 = arith.constant 0 : i32
    return %arg0, %arg1 : i32, i32
  }
  func.func @transform_6(%arg0: i32, %arg1: i32) -> (i32, i32) {
    %c0_i32 = arith.constant 0 : i32
    %c0_i32_0 = arith.constant 0 : i32
    return %arg0, %c0_i32 : i32, i32
  }
}

</mosaic_0001>

<bundles_post_ra>
// kernel: tpu_custom_call.1
= control target key start
LH: loop header
LB: loop body
LE: loop exit
PB: predicated region body
PF: predicated region fallthrough
CT: control target
= control target key end

     0   :  { %12 = vsyncpa [#allocation6], 0  ;;  %s833_s0 = inlined_call_operand.hbm [shape: bf16[8,128], index: 0, kind: input, shape index: {}]   ;;  %s834_s1 = inlined_call_operand.hbm [shape: bf16[128,128], index: 1, kind: input, shape index: {}]   ;;  %s835_s2 = inlined_call_operand.hbm [shape: f32[1,128], index: 2, kind: input, shape index: {}]   ;;  %s836_s3 = inlined_call_operand.hbm [shape: bf16[128,384], index: 3, kind: input, shape index: {}]   ;;  %s837_s4 = inlined_call_operand.vmem [shape: f32[1,384], index: 4, kind: input, shape index: {}]   ;;  %s838_s5 = inlined_call_operand.hbm [shape: f32[8,384], index: 5, kind: output, shape index: {0}]   ;;  %s839_s6 = inlined_call_operand.vmem [shape: f32[8,1], index: 6, kind: output, shape index: {1}]  }
   0x1   :  { %13 = vsyncpa [#allocation9], 0 }
   0x2   :  { %14 = vsyncpa [#allocation12], 0  ;;  %s31_s23 = sshll.u32 %s834_s1, 4  ;;  %s32_s23 = int_to_ptr.hbm [resolvable:$true] %s31_s23 }
   0x3   :  { %15 = vsyncpa [#allocation7], 0  ;;  %s760_s24 = smov [#allocation8]   ;;  %s21_s28 = sshll.u32 %s833_s0, 4  ;;  %s22_s28 = int_to_ptr.hbm [resolvable:$true] %s21_s28 }
   0x4   :  { %s33_s25 = sshll.u32 %s760_s24, 4  ;;  %s761_s29 = smov 64   ;;  %s34_s25 = int_to_ptr.vmem [resolvable:$true] %s33_s25 }
   0x5   :  { %s762_s30 = smov 4   ;;  %s763_s7 = smov [#allocation5]  }
   0x6   :  { %39 = dma.hbm_to_vmem [thread:$0]  %s32_s23, 1024, %s34_s25, [#allocation9], %s761_s29, %s761_s29, %s762_s30  }
   0x7   :  { %s23_s8 = sshll.u32 %s763_s7, 4  ;;  %s45_s11 = sshll.u32 %s835_s2, 4  ;;  %s24_s8 = int_to_ptr.vmem [resolvable:$true] %s23_s8  ;;  %s46_s11 = int_to_ptr.hbm [resolvable:$true] %s45_s11 }
   0x8   :  { %26 = dma.hbm_to_vmem [thread:$0]  %s22_s28, 64, %s24_s8, [#allocation6]  }
   0x9   :  { %s55_s13 = sshll.u32 %s836_s3, 4  ;;  %s764_s14 = smov [#allocation10]   ;;  %s56_s13 = int_to_ptr.hbm [resolvable:$true] %s55_s13 }
   0xa   :  { %s47_s15 = sshll.u32 %s764_s14, 4  ;;  %s765_s0 = smov [#allocation11]   ;;  %s48_s15 = int_to_ptr.vmem [resolvable:$true] %s47_s15 }
   0xb   :  { %50 = dma.hbm_to_vmem [thread:$0]  %s46_s11, 16, %s48_s15, [#allocation9]  }
   0xc   :  { %s57_s16 = sshll.u32 %s765_s0, 4  ;;  %s766_s17 = smov 192   ;;  %s58_s16 = int_to_ptr.vmem [resolvable:$true] %s57_s16 }
   0xd   :  { %s767_s18 = smov 12  }
   0xe   :  { %63 = dma.hbm_to_vmem [thread:$0]  %s56_s13, 3072, %s58_s16, [#allocation12], %s766_s17, %s766_s17, %s767_s18  }
   0xf   :  { %752 = dma.done.wait [#allocation6], 64  }
  0x10   :  { %753 = vsyncadd [#allocation6], 4294967232 }
  0x11   :  { %754 = dma.done.wait [#allocation9], 1040  }
  0x12   :  { %755 = vsyncadd [#allocation9], 4294966256 }
  0x13   :  { %756 = dma.done.wait [#allocation12], 3072  }
  0x14   :  { %757 = vsyncadd [#allocation12], 4294964224  ;;  %v583_v0 = vld [vmem:[#allocation8 + $0x38] sm:$0xff]  ;;  %v582_v1 = vld [vmem:[#allocation8 + $0x30] sm:$0xff]  ;;  %vm171_vm0 = vcmask 7168   ;;  %s432_s22 = sshll.u32 %s838_s5, 4  ;;  %s433_s22 = int_to_ptr.hbm [resolvable:$true] %s432_s22 }
  0x15   :  { %155 = vmatpush.bf16.msra.mxu0 %v583_v0  ;;  %v566_v2 = vld [vmem:[#allocation11 + $0xa8] sm:$0xf]  ;;  %v606_v3 = vld [vmem:[#allocation11 + $0xb0] sm:$0xf0]  ;;  %v605_v4 = vld [vmem:[#allocation11 + $0xac] sm:$0xf] }
  0x16   :  { %v581_v5 = vld [vmem:[#allocation8 + $0x28] sm:$0xff]  ;;  %v567_v6 = vor.u32 %v606_v3, %v566_v2  ;;  %v568_v7 = vld [vmem:[#allocation11 + $0xb4] sm:$0xf0]  ;;  %v574_v8 = vld [vmem:[#allocation11 + $0xb0] sm:$0xf] }
  0x17   :  { %v607_v9 = vld [vmem:[#allocation11 + $0xb8] sm:$0xf0]  ;;  %v571_v10 = vor.u32 %v605_v4, %v568_v7  ;;  %v554_v12 = vld [vmem:[#allocation11 + $0x90] sm:$0xf]  ;;  %v602_v14 = vld [vmem:[#allocation11 + $0x94] sm:$0xf] }
  0x18   :  { %v575_v11 = vor.u32 %v607_v9, %v574_v8  ;;  %v603_v13 = vld [vmem:[#allocation11 + $0x98] sm:$0xf0]  ;;  %343 = vmatpush.bf16.msra.mxu1 %v567_v6  ;;  %v556_v16 = vld [vmem:[#allocation11 + $0x9c] sm:$0xf0]  ;;  %v562_v17 = vld [vmem:[#allocation11 + $0x98] sm:$0xf] }
  0x19   :  { %156 = vmatpush.bf16.msra.mxu0 %v582_v1  ;;  %v555_v15 = vor.u32 %v603_v13, %v554_v12  ;;  %v604_v18 = vld [vmem:[#allocation11 + $0xa0] sm:$0xf0]  ;;  %356 = vmatpush.bf16.msra.mxu2 %v571_v10  ;;  %v559_v19 = vor.u32 %v602_v14, %v556_v16  ;;  %v542_v21 = vld [vmem:[#allocation11 + $0x78] sm:$0xf]  ;;  %v599_v23 = vld [vmem:[#allocation11 + $0x7c] sm:$0xf] }
  0x1a   :  { %369 = vmatpush.bf16.msra.mxu3 %v575_v11  ;;  %v563_v20 = vor.u32 %v604_v18, %v562_v17  ;;  %v600_v22 = vld [vmem:[#allocation11 + $0x80] sm:$0xf0]  ;;  %v544_v24 = vld [vmem:[#allocation11 + $0x84] sm:$0xf0]  ;;  %v550_v25 = vld [vmem:[#allocation11 + $0x80] sm:$0xf] }
  0x1b   :  { %v601_v26 = vld [vmem:[#allocation11 + $0x88] sm:$0xf0]  ;;  %v580_v27 = vld [vmem:[#allocation8 + $0x20] sm:$0xff]  ;;  %v543_v28 = vor.u32 %v600_v22, %v542_v21  ;;  %v547_v30 = vor.u32 %v599_v23, %v544_v24  ;;  %v532_v34 = vld [vmem:[#allocation11 + $0x6c] sm:$0xf0]  ;;  %v768_v24 = vmov -inf  }
  0x1c   :  { %344 = vmatpush.bf16.msra.mxu1 %v555_v15  ;;  %v530_v29 = vld [vmem:[#allocation11 + $0x60] sm:$0xf]  ;;  %v551_v31 = vor.u32 %v601_v26, %v550_v25  ;;  %v597_v32 = vld [vmem:[#allocation11 + $0x68] sm:$0xf0]  ;;  %v596_v33 = vld [vmem:[#allocation11 + $0x64] sm:$0xf] }
  0x1d   :  { %157 = vmatpush.bf16.msra.mxu0 %v581_v5  ;;  %357 = vmatpush.bf16.msra.mxu2 %v559_v19  ;;  %v538_v35 = vld [vmem:[#allocation11 + $0x68] sm:$0xf]  ;;  %v598_v36 = vld [vmem:[#allocation11 + $0x70] sm:$0xf0]  ;;  %v531_v38 = vor.u32 %v597_v32, %v530_v29  ;;  %v535_v39 = vor.u32 %v596_v33, %v532_v34  ;;  %v576_v43 = vld [vmem:[#allocation8] sm:$0xff]  ;;  %172 = vst.msk [vmem:[#allocation3] sm:$0xff] %vm171_vm0, %v768_v24 }
  0x1e   :  { %370 = vmatpush.bf16.msra.mxu3 %v563_v20  ;;  %v579_v37 = vld [vmem:[#allocation8 + $0x18] sm:$0xff]  ;;  %v539_v40 = vor.u32 %v598_v36, %v538_v35  ;;  %v578_v41 = vld [vmem:[#allocation8 + $0x10] sm:$0xff]  ;;  %v577_v42 = vld [vmem:[#allocation8 + $0x8] sm:$0xff] }
  0x1f   :  { %v86_v44 = vld [vmem:[#allocation5] sm:$0xf]  ;;  %v518_v45 = vld [vmem:[#allocation11 + $0x48] sm:$0xf]  ;;  %v594_v46 = vld [vmem:[#allocation11 + $0x50] sm:$0xf0] }
  0x20   :  { %345 = vmatpush.bf16.msra.mxu1 %v543_v28  ;;  %v593_v47 = vld [vmem:[#allocation11 + $0x4c] sm:$0xf]  ;;  %v519_v48 = vor.u32 %v594_v46, %v518_v45  ;;  %v520_v49 = vld [vmem:[#allocation11 + $0x54] sm:$0xf0]  ;;  %v526_v50 = vld [vmem:[#allocation11 + $0x50] sm:$0xf] }
  0x21   :  { %158 = vmatpush.bf16.msra.mxu0 %v580_v27  ;;  %358 = vmatpush.bf16.msra.mxu2 %v547_v30  ;;  %v595_v51 = vld [vmem:[#allocation11 + $0x58] sm:$0xf0]  ;;  %v523_v52 = vor.u32 %v593_v47, %v520_v49  ;;  %v506_v54 = vld [vmem:[#allocation11 + $0x30] sm:$0xf]  ;;  %v590_v56 = vld [vmem:[#allocation11 + $0x34] sm:$0xf] }
  0x22   :  { %371 = vmatpush.bf16.msra.mxu3 %v551_v31  ;;  %v527_v53 = vor.u32 %v595_v51, %v526_v50  ;;  %v591_v55 = vld [vmem:[#allocation11 + $0x38] sm:$0xf0]  ;;  %v508_v58 = vld [vmem:[#allocation11 + $0x3c] sm:$0xf0]  ;;  %v514_v59 = vld [vmem:[#allocation11 + $0x38] sm:$0xf] }
  0x23   :  { %v507_v57 = vor.u32 %v591_v55, %v506_v54  ;;  %v592_v60 = vld [vmem:[#allocation11 + $0x40] sm:$0xf0]  ;;  %v511_v61 = vor.u32 %v590_v56, %v508_v58  ;;  %v494_v63 = vld [vmem:[#allocation11 + $0x18] sm:$0xf]  ;;  %v587_v1 = vld [vmem:[#allocation11 + $0x1c] sm:$0xf] }
  0x24   :  { %346 = vmatpush.bf16.msra.mxu1 %v531_v38  ;;  %v515_v62 = vor.u32 %v592_v60, %v514_v59  ;;  %v588_v0 = vld [vmem:[#allocation11 + $0x20] sm:$0xf0]  ;;  %v496_v3 = vld [vmem:[#allocation11 + $0x24] sm:$0xf0]  ;;  %v502_v4 = vld [vmem:[#allocation11 + $0x20] sm:$0xf] }
  0x25   :  { %159 = vmatpush.bf16.msra.mxu0 %v579_v37  ;;  %359 = vmatpush.bf16.msra.mxu2 %v535_v39  ;;  %v495_v2 = vor.u32 %v588_v0, %v494_v63  ;;  %v589_v5 = vld [vmem:[#allocation11 + $0x28] sm:$0xf0]  ;;  %v499_v6 = vor.u32 %v587_v1, %v496_v3  ;;  %v482_v8 = vld [vmem:[#allocation11] sm:$0xf]  ;;  %v584_v10 = vld [vmem:[#allocation11 + $0x4] sm:$0xf] }
  0x26   :  { %372 = vmatpush.bf16.msra.mxu3 %v539_v40  ;;  %v503_v7 = vor.u32 %v589_v5, %v502_v4  ;;  %v585_v9 = vld [vmem:[#allocation11 + $0x8] sm:$0xf0]  ;;  %v484_v12 = vld [vmem:[#allocation11 + $0xc] sm:$0xf0]  ;;  %v490_v13 = vld [vmem:[#allocation11 + $0x8] sm:$0xf] }
  0x27   :  { %v483_v11 = vor.u32 %v585_v9, %v482_v8  ;;  %v586_v14 = vld [vmem:[#allocation11 + $0x10] sm:$0xf0]  ;;  %v487_v15 = vor.u32 %v584_v10, %v484_v12  ;;  %v621_v17 = vld [vmem:[#allocation10] ss:$0 sm:$0xff]  ;;  %v207_v25 = vld [vmem:[%s837_s4] sm:$0x7] }
  0x28   :  { %347 = vmatpush.bf16.msra.mxu1 %v519_v48  ;;  %v491_v16 = vor.u32 %v586_v14, %v490_v13  ;;  %v209_v26 = vperm.slane %v207_v25, 0  ;;  %v210_v29 = vperm.slane %v207_v25, 1  ;;  %v211_v30 = vperm.slane %v207_v25, 2  ;;  %s771_s4 = smov [#allocation13]  }
  0x29   :  { %160 = vmatpush.bf16.msra.mxu0 %v578_v41  ;;  %360 = vmatpush.bf16.msra.mxu2 %v523_v52  ;;  %v769_v40 = vmov 0   ;;  %v770_v41 = vmov 0.0   ;;  %s430_s19 = sshll.u32 %s771_s4, 4  ;;  %s431_s19 = int_to_ptr.vmem [resolvable:$true] %s430_s19 }
  0x2a   :  { %373 = vmatpush.bf16.msra.mxu3 %v527_v53  ;;  %620 = vset.pattern.permute.xlu0 %v769_v40  ;;  %173 = vst.msk [vmem:[#allocation4] sm:$0xff] %vm171_vm0, %v770_v41 }
  0x2c   :  { %348 = vmatpush.bf16.msra.mxu1 %v507_v57 }
  0x2d   :  { %161 = vmatpush.bf16.msra.mxu0 %v577_v42  ;;  %361 = vmatpush.bf16.msra.mxu2 %v511_v61  ;;  %v382_v42 = vld [vmem:[#allocation3] sm:$0xff] }
  0x2e   :  { %374 = vmatpush.bf16.msra.mxu3 %v515_v62 }
  0x30   :  { %349 = vmatpush.bf16.msra.mxu1 %v495_v2 }
  0x31   :  { %162 = vmatpush.bf16.msra.mxu0 %v576_v43  ;;  %362 = vmatpush.bf16.msra.mxu2 %v499_v6  ;;  %v388_v60 = vld [vmem:[#allocation4] sm:$0xff] }
  0x32   :  { %375 = vmatpush.bf16.msra.mxu3 %v503_v7 }
  0x34   :  { %163 = vmatmul.bf16.vlgmr.msra.gmra.mxu0 %v86_v44  ;;  %350 = vmatpush.bf16.msra.mxu1 %v483_v11 }
  0x35   :  { %363 = vmatpush.bf16.msra.mxu2 %v487_v15 }
  0x36   :  { %376 = vmatpush.bf16.msra.mxu3 %v491_v16 }
  0xb1   :  { %v164_v18 = vpop.f32.mrf.mxu0 }
  0xb2   :  { %v165_v19 = vadd.f32 %v621_v17, %v164_v18 }
  0xb4   :  { %v168_v20 = vmax.f32 %v165_v19, 0.0 }
  0xb6   :  { %v169_v21 = vpack.c.bf16 %v168_v20, %v168_v20 }
  0xb8   :  { %170 = vst [vmem:[#allocation2] sm:$0xf] %v169_v21 }
  0xb9   :  { %v166_v22 = vpop.f32.mrf.mxu0 }
  0xbf   :  { %v174_v23 = vld [vmem:[#allocation2] sm:$0xf] }
  0xc0   :  { %351 = vmatmul.bf16.vlgmr.msra.gmra.mxu1 %v174_v23  ;;  %364 = vmatmul.bf16.vlgmr.msra.gmra.mxu2 %v174_v23 }
  0xc1   :  { %377 = vmatmul.bf16.vlgmr.msra.gmra.mxu3 %v174_v23 }
 0x13d   :  { %v352_v27 = vpop.f32.mrf.mxu1 }
 0x13e   :  { %v353_v28 = vadd.f32 %v352_v27, %v209_v26 }
 0x140   :  { %415 = vst [vmem:[#allocation13] sm:$0xff] %v353_v28 }
 0x143   :  { %v365_v31 = vpop.f32.mrf.mxu2 }
 0x144   :  { %v366_v32 = vadd.f32 %v365_v31, %v210_v29  ;;  %v378_v33 = vpop.f32.mrf.mxu3 }
 0x145   :  { %v379_v34 = vadd.f32 %v378_v33, %v211_v30  ;;  %v354_v35 = vpop.f32.mrf.mxu1 }
 0x146   :  { %416 = vst [vmem:[#allocation13 + $0x8] sm:$0xff] %v366_v32  ;;  %v383_v36 = vmax.f32 %v353_v28, %v366_v32 }
 0x147   :  { %417 = vst [vmem:[#allocation13 + $0x10] sm:$0xff] %v379_v34 }
 0x148   :  { %v384_v37 = vmax.f32 %v383_v36, %v379_v34  ;;  %435 = dma.vmem_to_hbm [thread:$0]  %s431_s19, 384, %s433_s22, [#allocation7]  }
 0x14a   :  { %385 = vmax.xlane.f32.xlu0 %v384_v37 }
 0x14b   :  { %v367_v38 = vpop.f32.mrf.mxu2 }
 0x14c   :  { %v380_v39 = vpop.f32.mrf.mxu3 }
 0x1bd   :  { %v386_v43 = vpop.xlane.xlu0 %385 }
 0x1be   :  { %v387_v44 = vmax.f32 %v382_v42, %v386_v43 }
 0x1c0   :  { %413 = vst.msk [vmem:[#allocation3] sm:$0xff] %vm171_vm0, %v387_v44  ;;  %395 = vperm.xlu0 %620, %v387_v44   ;;  %v389_v57 = vsub.f32 %v382_v42, %v387_v44 }
 0x1c2   :  { %v390_v58 = vmul.f32 1.442695, %v389_v57 }
 0x232   :  { %v396_v45 = vpop.permute.xlu0 %395 }
 0x233   :  { %v398_v46 = vsub.f32 %v353_v28, %v396_v45  ;;  %v399_v47 = vsub.f32 %v366_v32, %v396_v45  ;;  %v400_v48 = vsub.f32 %v379_v34, %v396_v45 }
 0x235   :  { %v401_v49 = vmul.f32 1.442695, %v398_v46  ;;  %v403_v50 = vmul.f32 1.442695, %v399_v47  ;;  %v405_v51 = vmul.f32 1.442695, %v400_v48 }
 0x237   :  { %622 = vpow2.f32 %v401_v49 }
 0x238   :  { %624 = vpow2.f32 %v403_v50 }
 0x239   :  { %626 = vpow2.f32 %v405_v51 }
 0x23a   :  { %628 = vpow2.f32 %v390_v58 }
 0x23d   :  { %v623_v52 = vpop.eup %622 }
 0x23e   :  { %v625_v53 = vpop.eup %624 }
 0x23f   :  { %v407_v54 = vadd.f32 %v625_v53, %v623_v52  ;;  %v627_v55 = vpop.eup %626 }
 0x240   :  { %v629_v59 = vpop.eup %628 }
 0x241   :  { %v408_v56 = vadd.f32 %v627_v55, %v407_v54  ;;  %v392_v61 = vmul.f32 %v629_v59, %v388_v60 }
 0x243   :  { %409 = vadd.xlane.f32.xlu1 %v408_v56 }
 0x2b6   :  { %v410_v62 = vpop.xlane.xlu1 %409 }
 0x2b7   :  { %v411_v63 = vadd.f32 %v410_v62, %v392_v61 }
 0x2b9   :  { %414 = vst.msk [vmem:[#allocation4] sm:$0xff] %vm171_vm0, %v411_v63  ;;  %630 = vlog2.f32 %v411_v63 }
 0x2bf   :  { %v631_v0 = vpop.eup %630 }
 0x2c0   :  { %v422_v1 = vmul.f32 0.6931472, %v631_v0 }
 0x2c2   :  { %v423_v2 = vadd.f32 %v422_v1, %v387_v44 }
 0x2c4   :  { %424 = vst.msk [vmem:[%s839_s6] sm:$0xff] %vm171_vm0, %v423_v2 }
 0x2c5   :  { %758 = dma.done.wait [#allocation7], 384  }
 0x2c6   :  { %759 = vsyncadd [#allocation7], 4294966912 }
 0x2c7   :  { %444 = vsyncpa [#allocation6], 1 }
 0x2c8   :  { %445 = vsyncpa [#allocation9], 1 }
 0x2c9   :  { %446 = vsyncpa [#allocation12], 1 }
 0x2ca   :  { %447 = vsyncpa [#allocation7], 1 }

</bundles_post_ra>
